<compile_context>
chip_gen: v6e
topology: v6e:2x2x1
jax: 0.10.0
libtpu: 0.0.40
codegen_flags: <defaults>
</compile_context>

<pallas_src>
import jax
import jax.numpy as jnp
from jax.experimental import pallas as pl
from jax.experimental.pallas import tpu as pltpu

LANES = 128  # vreg lane width


def _affine_kernel(w_ref, b_ref, x_ref, o_ref):
    # w_ref, b_ref: (1,) f32 scalars in SMEM (scalar prefetch).
    # x_ref, o_ref: (block_rows, 128) tiles in VMEM.
    w = w_ref[0]
    b = b_ref[0]
    # Scalar-from-SMEM multiply broadcasts for free on the VPU.
    o_ref[...] = (x_ref[...] * w + b).astype(o_ref.dtype)


def _sublane_multiple(dtype) -> int:
    """Minimum second-minor tile multiple for a dtype (f32:8, bf16:16, int8/fp8:32)."""
    itemsize = jnp.dtype(dtype).itemsize
    if itemsize >= 4:
        return 8
    if itemsize == 2:
        return 16
    return 32


def _affine_slab(x_slab, w_smem, b_smem, *, block_rows):
    """Run y = x*w + b over a lane-dense (rows, 128) slab."""
    rows, lanes = x_slab.shape
    sub = _sublane_multiple(x_slab.dtype)

    # Tile selection: as big as requested, but always >= 2 grid steps when there is
    # enough data so the "parallel" axis can split across v7x's two TensorCores.
    br = min(block_rows, rows)
    if br == rows and rows >= 2 * sub:
        br = (rows // 2) // sub * sub
    br = max(sub, br // sub * sub)

    grid = (pl.cdiv(rows, br),)

    elems = rows * lanes
    itemsize = jnp.dtype(x_slab.dtype).itemsize

    return pl.pallas_call(
        _affine_kernel,
        out_shape=jax.ShapeDtypeStruct((rows, lanes), x_slab.dtype),
        grid_spec=pltpu.PrefetchScalarGridSpec(
            num_scalar_prefetch=2,            # weight, bias -> SMEM
            grid=grid,
            in_specs=[
                pl.BlockSpec((br, lanes), lambda i, w, b: (i, 0)),
            ],
            out_specs=pl.BlockSpec((br, lanes), lambda i, w, b: (i, 0)),
        ),
        compiler_params=pltpu.CompilerParams(
            dimension_semantics=("parallel",),      # megacore split on v7x
            vmem_limit_bytes=32 * 1024 * 1024,      # safe on v5e (16 MiB default) & v7x
        ),
        cost_estimate=pl.CostEstimate(
            flops=2 * elems,
            transcendentals=0,
            bytes_accessed=2 * elems * itemsize,
        ),
    )(w_smem, b_smem, x_slab)


def lr_model2_forward(x, weight, bias, *, block_rows=2048, min_pallas_elems=64 * 1024):
    """Equivalent to torch.nn.Linear(1, 1)(x) for x of shape (N, 1).

    weight: (1, 1), bias: (1,)  (PyTorch Linear parameter shapes).
    """
    n, in_features = x.shape
    assert in_features == 1, "LRModel2 expects x of shape (N, 1)"
    out_dtype = x.dtype

    w_scalar = weight.reshape(()).astype(jnp.float32)
    b_scalar = bias.reshape(()).astype(jnp.float32)

    # --- small-N fast path: launch/repack overhead dominates; XLA fusion wins ---
    if n < min_pallas_elems:
        return (x.astype(jnp.float32) * w_scalar + b_scalar).astype(out_dtype)

    sub = _sublane_multiple(out_dtype)
    align = sub * LANES

    w_smem = weight.reshape(1).astype(jnp.float32)
    b_smem = bias.reshape(1).astype(jnp.float32)

    flat = x.reshape(-1)

    if n % align == 0:
        # --- zero-copy lane-dense repack: (N,1) -> (N/128, 128) is a free bitcast ---
        y_slab = _affine_slab(
            flat.reshape(n // LANES, LANES), w_smem, b_smem, block_rows=block_rows
        )
        return y_slab.reshape(n, 1)

    # --- ragged fallback (rare for large N): pad to a full slab, slice afterwards.
    # Costs ~2 extra HBM passes; prefer N a multiple of sublane*128.
    rows_padded = -(-n // align) * sub          # ceil(n/align) aligned row groups
    padded_elems = rows_padded * LANES
    flat = jnp.pad(flat, (0, padded_elems - n))
    y_slab = _affine_slab(
        flat.reshape(rows_padded, LANES), w_smem, b_smem, block_rows=block_rows
    )
    return y_slab.reshape(-1)[:n].reshape(n, 1)


if __name__ == "__main__":
    key = jax.random.PRNGKey(0)
    kx, kw, kb, kx2, kx3 = jax.random.split(key, 5)

    # Deterministic parameter init mimicking PyTorch Linear's U(-1/sqrt(in), 1/sqrt(in)).
    weight = jax.random.uniform(kw, (1, 1), minval=-1.0, maxval=1.0, dtype=jnp.float32)
    bias = jax.random.uniform(kb, (1,), minval=-1.0, maxval=1.0, dtype=jnp.float32)

    # 1) Small batch consistent with the module (batch=8, features=1): fast path.
    x_small = jax.random.normal(kx, (8, 1), dtype=jnp.float32)
    y_small = lr_model2_forward(x_small, weight, bias)
    jax.block_until_ready(y_small)
    ref_small = x_small @ weight.T + bias
    assert y_small.shape == ref_small.shape
    assert jnp.allclose(y_small, ref_small, atol=1e-6)

    # 2) Aligned batch forced through the Pallas kernel (zero-copy repack, 2 tiles).
    x_aligned = jax.random.normal(kx2, (4096, 1), dtype=jnp.float32)
    y_aligned = lr_model2_forward(x_aligned, weight, bias, min_pallas_elems=0)
    jax.block_until_ready(y_aligned)
    ref_aligned = x_aligned @ weight.T + bias
    assert y_aligned.shape == ref_aligned.shape
    assert jnp.allclose(y_aligned, ref_aligned, atol=1e-6)

    # 3) Ragged batch forced through the Pallas kernel (pad+slice fallback).
    x_ragged = jax.random.normal(kx3, (4100, 1), dtype=jnp.float32)
    y_ragged = lr_model2_forward(x_ragged, weight, bias, min_pallas_elems=0)
    jax.block_until_ready(y_ragged)
    ref_ragged = x_ragged @ weight.T + bias
    assert y_ragged.shape == ref_ragged.shape
    assert jnp.allclose(y_ragged, ref_ragged, atol=1e-6)

    print("KERNEL_OK")
</pallas_src>

<mosaic_0001>
module attributes {stable_mosaic.version = 11 : i64} {
  func.func @_affine_kernel(%arg0: i32, %arg1: memref<1xf32, #tpu.memory_space<smem>>, %arg2: memref<1xf32, #tpu.memory_space<smem>>, %arg3: memref<16x128xf32, #tpu.memory_space<vmem>>, %arg4: memref<16x128xf32, #tpu.memory_space<vmem>>) attributes {dimension_semantics = [#tpu.dimension_semantics<parallel>], iteration_bounds = array<i64: 2>, scalar_prefetch = 2 : i64, scratch_operands = 0 : i64, tpu.core_type = #tpu.core_type<tc>, window_params = [{transform_indices = @transform_0, window_bounds = array<i64: 16, 128>}, {transform_indices = @transform_1, window_bounds = array<i64: 16, 128>}]} {
    %c0 = arith.constant 0 : index
    %0 = memref.load %arg1[%c0] : memref<1xf32, #tpu.memory_space<smem>>
    %c0_0 = arith.constant 0 : index
    %1 = memref.load %arg2[%c0_0] : memref<1xf32, #tpu.memory_space<smem>>
    %c0_1 = arith.constant 0 : index
    %c0_2 = arith.constant 0 : index
    %2 = vector.load %arg3[%c0_1, %c0_2] : memref<16x128xf32, #tpu.memory_space<vmem>>, vector<16x128xf32>
    %3 = vector.broadcast %0 : f32 to vector<16x128xf32>
    %4 = arith.mulf %2, %3 : vector<16x128xf32>
    %5 = vector.broadcast %1 : f32 to vector<16x128xf32>
    %6 = arith.addf %4, %5 : vector<16x128xf32>
    %c0_3 = arith.constant 0 : index
    %c0_4 = arith.constant 0 : index
    %7 = vector.load %arg4[%c0_3, %c0_4] : memref<16x128xf32, #tpu.memory_space<vmem>>, vector<16x128xf32>
    tpu.vector_store %arg4[%c0_3, %c0_4], %6 {strides = array<i32>} : memref<16x128xf32, #tpu.memory_space<vmem>>, vector<16x128xf32>,
    return
  }
  func.func @transform_0(%arg0: i32, %arg1: memref<1xf32, #tpu.memory_space<smem>>, %arg2: memref<1xf32, #tpu.memory_space<smem>>) -> (i32, i32) {
    %c0_i32 = arith.constant 0 : i32
    %c0_i32_0 = arith.constant 0 : i32
    return %arg0, %c0_i32 : i32, i32
  }
  func.func @transform_1(%arg0: i32, %arg1: memref<1xf32, #tpu.memory_space<smem>>, %arg2: memref<1xf32, #tpu.memory_space<smem>>) -> (i32, i32) {
    %c0_i32 = arith.constant 0 : i32
    %c0_i32_0 = arith.constant 0 : i32
    return %arg0, %c0_i32 : i32, i32
  }
}

</mosaic_0001>

<bundles_post_ra>
// kernel: tpu_custom_call.1
= control target key start
LH: loop header
LB: loop body
LE: loop exit
PB: predicated region body
PF: predicated region fallthrough
CT: control target
= control target key end

     0   :  { %s586_s0 = inlined_call_operand.<no memory space> [shape: f32[1], index: 0, kind: input, shape index: {}]   ;;  %s587_s1 = inlined_call_operand.<no memory space> [shape: f32[1], index: 1, kind: input, shape index: {}]   ;;  %s588_s2 = inlined_call_operand.hbm [shape: f32[32,128], index: 2, kind: input, shape index: {}]   ;;  %s589_s3 = inlined_call_operand.hbm [shape: f32[32,128], index: 3, kind: output, shape index: {}]  }
   0x1   :  { %8 = sst [smem:[#allocation3]] %s586_s0 }
   0x2   :  { %9 = sst [smem:[#allocation4]] %s587_s1 }
   0x3   :  { %10 = vsyncpa [#allocation6], 0 }
   0x4   :  { %12 = vsyncpa [#allocation6 + $0x1], 0 }
   0x5   :  { %13 = vsyncpa [#allocation7], 0 }
   0x6   :  { %15 = vsyncpa [#allocation7 + $0x1], 0  ;;  %s432_s16 = smov 0   ;;  %s434_s17 = smov 0  }
   0x7   :  { %s436_s18 = smov 0   ;;  %s438_s19 = smov 0  }
   0x8 LB: > { %s453_s0 = sadd.s32 4294967295, %s398_s19   ;;  %s240_s1 = sadd.s32 4294967294, %s398_s19   ;;  %s398_s19 = sphi %s438_s19, %s604_s19   ;;  %s394_s18 = sphi %s436_s18, %s603_s18   ;;  %s390_s17 = sphi %s434_s17, %s602_s17   ;;  %s386_s16 = sphi %s432_s16, %s601_s16  }
   0x9   : > { %s457_s20 = sadd.s32 1, %s398_s19   ;;  %s28_s21 = sadd.s32 1, %s394_s18 }
   0xa   : > { %s25_s22 = ssub.s32 %s398_s19, %s457_s20  ;;  %p35_p0 = scmp.ne.s32.totalorder %s394_s18, %s390_s17 }
   0xb   : > { %p26_p1 = scmp.eq.s32.totalorder %s25_s22, 0  ;;  %p36_p2 = scmp.eq.s32.totalorder %s398_s19, 0 }
   0xc   : > { %p41_p3 = scmp.ne.s32.totalorder %s390_s17, %s386_s16  ;;  %p42_p4 = scmp.eq.s32.totalorder %s453_s0, 0 }
   0xd   : > { %s469_s23 = scalar_select %p26_p1, %s394_s18, %s28_s21  }
   0xe   : > { %p471_p5 = por %p36_p2, %p35_p0  ;;  %p475_p6 = por %p42_p4, %p41_p3 }
   0xf   : > { %p65_p7 = scmp.eq.s32.totalorder %s453_s0, 1  ;;  %p71_p8 = scmp.eq.s32.totalorder %s240_s1, 1 }
  0x10   : > { %s593_s25 = scalar_select %p475_p6, 1, 0 }
  0x11   : > { %p268_p10 = scmp.lt.s32.totalorder %s398_s19, 2  ;;  %p482_p11 = por %p65_p7, %p35_p0 }
  0x12   : > { %p486_p12 = por %p71_p8, %p41_p3  ;;  %s91_s28 = sand.u32 1, %s394_s18  }
  0x13   : > { %s594_s26 = scalar_select %p482_p11, 1, 0 }
  0x14   : > { %s595_s27 = scalar_select %p486_p12, 1, 0 }
  0x15   : > { %s254_s29 = sshll.u32 %s398_s19, 8  ;;  %s243_s30 = sshll.u32 %s91_s28, 4 }
  0x16   : > { %s495_s6 = scalar_lea.hbm %s588_s2, %s254_s29  ;;  %s95_s7 = scalar_lea.vmem [#allocation5], %s243_s30 }
  0x17   : > { %s102_s8 = sshll.u32 %s95_s7, 4  ;;  %p499_p13 = pnand %p268_p10, %p471_p5  ;;  %s503_s8 = int_to_ptr.vmem [resolvable:$true] %s102_s8 }
  0x18   : > { %s505_s10 = scalar_lea.sflag [#allocation6], %s91_s28  ;;  %s306_s11 = scalar_lea.hbm %s495_s6, 256 }
  0x19   : > { %p307_p0 = scmp.ne.s32.totalorder %s495_s6, %s306_s11  ;;  %p308_p1 = pneg %p499_p13 }
  0x1a   : > { %s311_s14 = scalar_lea.hbm %s588_s2, 512  ;;  %p312_p4 = scmp.lt.s32.totalorder %s495_s6, %s588_s2 }
  0x1b   : > { %p309_p2 = pnand %p308_p1, %p307_p0  ;;  %p313_p5 = scmp.lt.s32.totalorder %s311_s14, %s306_s11 }
  0x1d   : > { %p310_p3 = pneg %p309_p2  ;;  %p314_p7 = por %p313_p5, %p312_p4 }
  0x1f   : > { %p315_p8 = pnand %p314_p7, %p310_p3 }
  0x21   : > { %318 = shalt.err (!%p315_p8)
}
  0x22   : > { %s319_s21 = scalar_lea.vmem %s503_s8, 256  ;;  %s400_s22 = smov [#allocation5]  }
  0x23   : > { %p320_p10 = scmp.ne.s32.totalorder %s503_s8, %s319_s21  ;;  %s324_s24 = sshll.u32 %s400_s22, 4  ;;  %s325_s24 = int_to_ptr.vmem [resolvable:$false] %s324_s24 }
  0x24   : > { %s326_s28 = scalar_lea.vmem %s325_s24, 512  ;;  %p327_p2 = scmp.lt.s32.totalorder %s503_s8, %s325_s24 }
  0x25   : > { %p322_p9 = pnand %p320_p10, %p308_p1  ;;  %p328_p12 = scmp.lt.s32.totalorder %s326_s28, %s319_s21 }
  0x27   : > { %p323_p0 = pneg %p322_p9  ;;  %p329_p11 = por %p328_p12, %p327_p2 }
  0x29   : > { %p330_p6 = pnand %p329_p11, %p323_p0 }
  0x2b   : > { %333 = shalt.err (!%p330_p6)
}
  0x2c   : > { %s401_s29 = smov 128   ;;  %s402_s30 = smov 8  }
  0x2d   : > { %263 = dma.hbm_to_vmem [thread:$0]  (!%p499_p13), %s495_s6, 256, %s503_s8, %s505_s10, %s401_s29, %s401_s29, %s402_s30  }
  0x2e   : > { %p246_p9 = scmp.ge.s32.totalorder %s398_s19, 1  ;;  %p110_p1 = scmp.lt.s32.totalorder %s398_s19, 3 }
  0x30   : > { %p111_p3 = pnand %p246_p9, %p110_p1 }
  0x31   : > { %s529_s4 = sand.u32 (!%p111_p3), 1, %s390_s17   ;;  %p597_p6 = scmp.ne.s32.totalorder (!%p111_p3), %s593_s25, 0 }
  0x32   : > { %114 = sbr.rel (%p111_p3) target bundleno = 83 (0x53), region = 24  ;;  %s247_s5 = sshll.u32 (!%p111_p3), %s529_s4, 4 }
  0x33   : > { %s117_s7 = scalar_lea.sflag (!%p111_p3), [#allocation6], %s529_s4  ;;  %s120_s11 = scalar_lea.vmem (!%p111_p3), [#allocation5], %s247_s5 }
  0x37   : > { %377 = dma.done.wait (%p597_p6), %s117_s7, 256  }
  0x38   : > { %379 = vsyncadd (%p597_p6), %s117_s7, 4294967040  ;;  %s141_s6 = sld [smem:[#allocation3]]  ;;  %s138_s9 = scalar_lea.vmem [#allocation8], %s247_s5  ;;  %v143_v0 = vld [vmem:[%s120_s11] sm:$0xff]  ;;  %v144_v2 = vld [vmem:[%s120_s11 + $0x8] sm:$0xff] }
  0x39   : > { %s142_s8 = sld [smem:[#allocation4]]  ;;  %s167_s10 = sshll.u32 %s138_s9, 4  ;;  %s538_s10 = int_to_ptr.vmem [resolvable:$true] %s167_s10 }
  0x3a   : > { %s255_s12 = sshll.u32 %s453_s0, 8  ;;  %s154_s15 = scalar_lea.sflag [#allocation7], %s529_s4 }
  0x3b   : > { %s543_s14 = scalar_lea.hbm %s589_s3, %s255_s12  ;;  %s334_s1 = scalar_lea.vmem %s538_s10, 256 }
  0x3c   : > { %p335_p11 = scmp.ne.s32.totalorder %s538_s10, %s334_s1  ;;  %p598_p12 = scmp.ne.s32.totalorder %s594_s26, 0 }
  0x3d   : > { %s403_s0 = smov [#allocation8]  }
  0x3e   : > { %v145_v1 = vstv %s141_s6  ;;  %p336_p13 = pnand %p335_p11, %p598_p12  ;;  %s338_s21 = sshll.u32 %s403_s0, 4  ;;  %s339_s21 = int_to_ptr.vmem [resolvable:$false] %s338_s21 }
  0x3f   : > { %v146_v3 = vmul.f32 %v145_v1, %v143_v0  ;;  %v148_v4 = vstv %s142_s8  ;;  %v147_v5 = vmul.f32 %v145_v1, %v144_v2  ;;  %s340_s22 = scalar_lea.vmem %s339_s21, 512  ;;  %p341_p5 = scmp.lt.s32.totalorder %s538_s10, %s339_s21 }
  0x40   : > { %p337_p4 = pneg %p336_p13  ;;  %p342_p7 = scmp.lt.s32.totalorder %s340_s22, %s334_s1 }
  0x41   : > { %v149_v6 = vadd.f32 %v148_v4, %v146_v3  ;;  %v150_v7 = vadd.f32 %v148_v4, %v147_v5 }
  0x42   : > { %p343_p8 = por %p342_p7, %p341_p5 }
  0x43   : > { %151 = vst [vmem:[%s138_s9] sm:$0xff] %v149_v6  ;;  %152 = vst [vmem:[%s138_s9 + $0x8] sm:$0xff] %v150_v7 }
  0x44   : > { %p344_p10 = pnand %p343_p8, %p337_p4 }
  0x46   : > { %347 = shalt.err (!%p344_p10)
}
  0x47   : > { %s348_s24 = scalar_lea.hbm %s543_s14, 256  ;;  %s352_s30 = scalar_lea.hbm %s589_s3, 512 }
  0x48   : > { %p349_p0 = scmp.ne.s32.totalorder %s543_s14, %s348_s24  ;;  %p353_p1 = scmp.lt.s32.totalorder %s543_s14, %s589_s3 }
  0x49   : > { %p354_p3 = scmp.lt.s32.totalorder %s352_s30, %s348_s24 }
  0x4a   : > { %p350_p2 = pnand %p349_p0, %p598_p12 }
  0x4b   : > { %p355_p6 = por %p354_p3, %p353_p1 }
  0x4c   : > { %p351_p9 = pneg %p350_p2 }
  0x4e   : > { %p356_p11 = pnand %p355_p6, %p351_p9 }
  0x50   : > { %359 = shalt.err (!%p356_p11)
}
  0x51   : > { %s404_s11 = smov 128   ;;  %s405_s6 = smov 8  }
  0x52   : > { %258 = dma.vmem_to_hbm [thread:$0]  (%p598_p12), %s538_s10, 256, %s543_s14, %s154_s15, %s404_s11, %s404_s11, %s405_s6  }
  0x53 PF: > { %s182_s8 = sand.u32 1, %s386_s16   ;;  %p599_p13 = scmp.ne.s32.totalorder %s595_s27, 0 }
  0x54   : > { %p600_p4 = scmp.ge.s32.totalorder %s398_s19, 2  ;;  %s183_s9 = scalar_lea.sflag [#allocation7], %s182_s8 }
  0x56   : > { %p265_p5 = pnand %p600_p4, %p599_p13 }
  0x58   : > { %p266_p7 = pneg %p265_p5 }
  0x5a   : > { %381 = dma.done.wait (%p266_p7), %s183_s9, 256  }
  0x5b   : > { %383 = vsyncadd (%p266_p7), %s183_s9, 4294967040  ;;  %p18_p8 = scmp.ge.s32.totalorder %s457_s20, 4   ;;  %s601_s16 = smov %s390_s17 }
  0x5c   : > { %s602_s17 = smov %s394_s18  ;;  %s603_s18 = smov %s469_s23 }
  0x5d   : > { %s604_s19 = smov %s457_s20  ;;  %20 = sbr.rel (!%p18_p8) target bundleno = 8 (0x8), region = 69 }
  0x62   :  { %188 = vsyncpa [#allocation6], 1 }
  0x63   :  { %190 = vsyncpa [#allocation6 + $0x1], 1 }
  0x64   :  { %191 = vsyncpa [#allocation7], 1 }
  0x65   :  { %193 = vsyncpa [#allocation7 + $0x1], 1 }

</bundles_post_ra>
